<compile_context>
chip_gen: v5e
topology: v5e:2x2
jax: 0.10.0
libtpu: 0.0.40
codegen_flags: <defaults>
</compile_context>

<pallas_src>
import numpy as np
import jax
import jax.numpy as jnp
from jax import lax
from jax.experimental import pallas as pl
from jax.experimental.pallas import tpu as pltpu

K = 5          # conv-transpose kernel size
COUT = 6       # conv-transpose output channels
KK = K * K


def _fused_kernel(cols_ref, w_ref, pw_ref, out_ref):
    # cols_ref: (KK, N*M)   f32 VMEM -- im2col of the zero-padded input,
    #                                   batch folded into the lane axis
    # w_ref   : (COUT, KK)  f32 VMEM -- spatially-flipped conv-t weights
    # pw_ref  : (COUT, 1)   f32 VMEM -- 0.995 * PReLU weights (fused neg slope)
    # out_ref : (COUT, N*M) f32 VMEM -- channels on sublanes, spatial on lanes
    z5 = jnp.dot(w_ref[...], cols_ref[...],
                 preferred_element_type=jnp.float32,
                 precision=lax.Precision.HIGHEST)          # one MXU call
    z9 = jnp.where(z5 > 0, z5, pw_ref[...] * z5)           # single vcmp+vsel

    # layer_norm over the whole slab (eps=1e-5), two-pass variance
    cnt = jnp.float32(z9.shape[0] * z9.shape[1])
    mean = jnp.sum(z9) / cnt
    d = z9 - mean
    var = jnp.sum(d * d) / cnt
    zn = d * lax.rsqrt(var + 1e-5)

    # log_softmax over the channel dim (sublane axis) -- per-lane, so it is
    # independent of how the batch was folded into the lane axis
    mx = jnp.max(zn, axis=0, keepdims=True)
    lse = mx + jnp.log(jnp.sum(jnp.exp(zn - mx), axis=0, keepdims=True))
    out_ref[...] = zn - lse


@jax.jit
def model_forward(x, conv_w, prelu_w):
    """x: (N, 1, H, W) f32 NCHW. Returns (N, COUT, H+K-1, W+K-1)."""
    n, cin, h, w = x.shape
    assert cin == 1
    ho, wo = h + K - 1, w + K - 1
    m = ho * wo
    pad = K - 1

    # Single-op im2col of the zero-padded input.  With Cin=1, patch-channel k
    # corresponds to filter tap (k // K, k % K); the 'CNHW' output spec puts
    # KK first so the flatten to (KK, N*M) is a free row-major reshape.
    cols = lax.conv_general_dilated_patches(
        x, filter_shape=(K, K), window_strides=(1, 1),
        padding=((pad, pad), (pad, pad)),
        dimension_numbers=("NCHW", "OIHW", "CNHW"),
    ).reshape(KK, n * m)

    # flip spatial dims so the transposed conv becomes a plain correlation
    wf = conv_w[0, :, ::-1, ::-1].reshape(COUT, KK).astype(jnp.float32)
    # pre-fold the 0.995 factor into the PReLU slope (fused-select trick)
    pw = (0.995 * prelu_w).reshape(COUT, 1).astype(jnp.float32)

    out = pl.pallas_call(
        _fused_kernel,
        out_shape=jax.ShapeDtypeStruct((COUT, n * m), jnp.float32),
        in_specs=[
            pl.BlockSpec(memory_space=pltpu.MemorySpace.VMEM),
            pl.BlockSpec(memory_space=pltpu.MemorySpace.VMEM),
            pl.BlockSpec(memory_space=pltpu.MemorySpace.VMEM),
        ],
        out_specs=pl.BlockSpec(memory_space=pltpu.MemorySpace.VMEM),
    )(cols, wf, pw)

    # (COUT, N*M) -> NCHW; small one-shot wrapper transpose (~19 KB).
    return jnp.transpose(out.reshape(COUT, n, ho, wo), (1, 0, 2, 3))


def reference(x, conv_w, prelu_w):
    """Pure-JAX reference: scatter-form ConvTranspose2d and the *unfused*
    select sequence of the original module."""
    n, _, h, w = x.shape
    ho, wo = h + K - 1, w + K - 1
    z5 = jnp.zeros((n, COUT, ho, wo), jnp.float32)
    for kh in range(K):
        for kw in range(K):
            z5 = z5.at[:, :, kh:kh + h, kw:kw + w].add(
                x[:, 0][:, None, :, :] * conv_w[0, :, kh, kw][None, :, None, None])
    z8 = jnp.where(z5 > 0, z5, z5 * 0.995)
    z9 = jnp.where(z8 > 0, z8, prelu_w[None, :, None, None] * z8)
    mean = jnp.mean(z9)
    var = jnp.mean((z9 - mean) ** 2)
    zn = (z9 - mean) / jnp.sqrt(var + 1e-5)
    return jax.nn.log_softmax(zn, axis=1)


if __name__ == "__main__":
    key = jax.random.PRNGKey(0)
    kx, kw = jax.random.split(key)

    # small shapes consistent with the module's forward (N, 1, H, W)
    N, H, W = 2, 16, 16
    x = jax.random.normal(kx, (N, 1, H, W), jnp.float32)

    # ConvTranspose2d(1, 6, 5) weight: shape (in=1, out=6, 5, 5)
    bound = 1.0 / float(np.sqrt(1 * K * K))
    conv_w = jax.random.uniform(kw, (1, COUT, K, K), jnp.float32, -bound, bound)
    # PReLU default init: 0.25 per channel
    prelu_w = jnp.full((COUT,), 0.25, jnp.float32)

    out = jax.block_until_ready(model_forward(x, conv_w, prelu_w))
    assert out.shape == (N, COUT, H + K - 1, W + K - 1)

    ref = reference(x, conv_w, prelu_w)
    np.testing.assert_allclose(np.asarray(out), np.asarray(ref), rtol=1e-4, atol=1e-4)

    print("KERNEL_OK")
</pallas_src>

<mosaic_0001>
module attributes {stable_mosaic.version = 11 : i64} {
  func.func @_fused_kernel(%arg0: memref<25x800xf32, #tpu.memory_space<vmem>>, %arg1: memref<6x25xf32, #tpu.memory_space<vmem>>, %arg2: memref<6x1xf32, #tpu.memory_space<vmem>>, %arg3: memref<6x800xf32, #tpu.memory_space<vmem>>) attributes {dimension_semantics = [], scalar_prefetch = 0 : i64, scratch_operands = 0 : i64, tpu.core_type = #tpu.core_type<tc>} {
    %c0 = arith.constant 0 : index
    %c0_0 = arith.constant 0 : index
    %0 = vector.load %arg1[%c0, %c0_0] : memref<6x25xf32, #tpu.memory_space<vmem>>, vector<6x25xf32>
    %c0_1 = arith.constant 0 : index
    %c0_2 = arith.constant 0 : index
    %1 = vector.load %arg0[%c0_1, %c0_2] : memref<25x800xf32, #tpu.memory_space<vmem>>, vector<25x800xf32>
    %cst = arith.constant dense<0.000000e+00> : vector<6x800xf32>
    %2 = tpu.matmul %0, %1, %cst {dimension_numbers = #tpu.dot_dimension_numbers<[1], [0], [0], [1], [0, 0, 1, 1], [], []>, precision = #tpu.contract_precision<fp32>} : vector<6x25xf32>, vector<25x800xf32>, vector<6x800xf32> -> vector<6x800xf32>
    %cst_3 = arith.constant 0.000000e+00 : f32
    %3 = vector.broadcast %cst_3 : f32 to vector<6x800xf32>
    %4 = arith.cmpf ogt, %2, %3 : vector<6x800xf32>
    %c0_4 = arith.constant 0 : index
    %c0_5 = arith.constant 0 : index
    %5 = vector.load %arg2[%c0_4, %c0_5] : memref<6x1xf32, #tpu.memory_space<vmem>>, vector<6x1xf32>
    %6 = vector.broadcast %5 : vector<6x1xf32> to vector<6x800xf32>
    %7 = arith.mulf %6, %2 : vector<6x800xf32>
    %8 = arith.select %4, %2, %7 : vector<6x800xi1>, vector<6x800xf32>
    %9 = vector.shape_cast %8 : vector<6x800xf32> to vector<1x6x800xf32>
    %cst_6 = arith.constant dense<0.000000e+00> : vector<1xf32>
    %10 = vector.multi_reduction <add>, %9, %cst_6 [1, 2] : vector<1x6x800xf32> to vector<1xf32>
    %11 = vector.shape_cast %10 : vector<1xf32> to vector<1x1x1xf32>
    %12 = vector.extract %11[0, 0, 0] : f32 from vector<1x1x1xf32>
    %cst_7 = arith.constant 4.800000e+03 : f32
    %13 = arith.divf %12, %cst_7 : f32
    %14 = vector.broadcast %13 : f32 to vector<6x800xf32>
    %15 = arith.subf %8, %14 : vector<6x800xf32>
    %16 = arith.mulf %15, %15 : vector<6x800xf32>
    %17 = vector.shape_cast %16 : vector<6x800xf32> to vector<1x6x800xf32>
    %cst_8 = arith.constant dense<0.000000e+00> : vector<1xf32>
    %18 = vector.multi_reduction <add>, %17, %cst_8 [1, 2] : vector<1x6x800xf32> to vector<1xf32>
    %19 = vector.shape_cast %18 : vector<1xf32> to vector<1x1x1xf32>
    %20 = vector.extract %19[0, 0, 0] : f32 from vector<1x1x1xf32>
    %cst_9 = arith.constant 4.800000e+03 : f32
    %21 = arith.divf %20, %cst_9 : f32
    %cst_10 = arith.constant 9.99999974E-6 : f32
    %22 = arith.addf %21, %cst_10 : f32
    %23 = math.rsqrt %22 : f32
    %24 = vector.broadcast %23 : f32 to vector<6x800xf32>
    %25 = arith.mulf %15, %24 : vector<6x800xf32>
    %cst_11 = arith.constant dense<0xFF800000> : vector<800xf32>
    %26 = vector.multi_reduction <maximumf>, %25, %cst_11 [0] : vector<6x800xf32> to vector<800xf32>
    %27 = vector.shape_cast %26 : vector<800xf32> to vector<1x800xf32>
    %28 = vector.broadcast %27 : vector<1x800xf32> to vector<6x800xf32>
    %29 = arith.subf %25, %28 : vector<6x800xf32>
    %30 = math.exp %29 : vector<6x800xf32>
    %cst_12 = arith.constant dense<0.000000e+00> : vector<800xf32>
    %31 = vector.multi_reduction <add>, %30, %cst_12 [0] : vector<6x800xf32> to vector<800xf32>
    %32 = vector.shape_cast %31 : vector<800xf32> to vector<1x800xf32>
    %33 = math.log %32 : vector<1x800xf32>
    %34 = arith.addf %27, %33 : vector<1x800xf32>
    %35 = vector.broadcast %34 : vector<1x800xf32> to vector<6x800xf32>
    %36 = arith.subf %25, %35 : vector<6x800xf32>
    %c0_13 = arith.constant 0 : index
    %c0_14 = arith.constant 0 : index
    %37 = vector.load %arg3[%c0_13, %c0_14] : memref<6x800xf32, #tpu.memory_space<vmem>>, vector<6x800xf32>
    tpu.vector_store %arg3[%c0_13, %c0_14], %36 {strides = array<i32>} : memref<6x800xf32, #tpu.memory_space<vmem>>, vector<6x800xf32>,
    return
  }
}

</mosaic_0001>

<bundles_post_ra>
// kernel: model_forward.1
= control target key start
LH: loop header
LB: loop body
LE: loop exit
PB: predicated region body
PF: predicated region fallthrough
CT: control target
= control target key end

     0   :  { %vm47_vm0 = vcmask 1040384   ;;  %vm43_vm1 = vcmask 203776   ;;  %vm1391_vm6 = vcmask 1045504   ;;  %vm1403_vm10 = vcmask 259072   ;;  %s2350_s0 = inlined_call_operand.vmem [shape: f32[25,800], index: 0, kind: input, shape index: {}]   ;;  %s2351_s1 = inlined_call_operand.vmem [shape: f32[6,25], index: 1, kind: input, shape index: {}]   ;;  %s2352_s2 = inlined_call_operand.vmem [shape: f32[6,1], index: 2, kind: input, shape index: {}]   ;;  %s2353_s3 = inlined_call_operand.vmem [shape: f32[6,800], index: 3, kind: output, shape index: {}]  }
   0x1   :  { %v36_v0 = vld [vmem:[%s2350_s0 + $0xa8] sm:$0x1]  ;;  %v29_v1 = vld [vmem:[%s2350_s0 + $0x70] sm:$0xff]  ;;  %v22_v2 = vld [vmem:[%s2350_s0 + $0x38] sm:$0xff] }
   0x2   :  { %v49_v3 = vsel %vm47_vm0, %v36_v0, 0  ;;  %v1724_v4 = vand.u32 4294901760, %v29_v1  ;;  %v1726_v5 = vand.u32 4294901760, %v22_v2  ;;  %v15_v6 = vld [vmem:[%s2350_s0] sm:$0xff]  ;;  %v37_v11 = vld [vmem:[%s2350_s0 + $0xb0] sm:$0x1] }
   0x3   :  { %v14_v7 = vld [vmem:[%s2351_s1] sm:$0x3f]  ;;  %v1734_v8 = vand.u32 4294901760, %v49_v3  ;;  %v1736_v9 = vand.u32 4294901760, %v15_v6  ;;  %v30_v12 = vld [vmem:[%s2350_s0 + $0x78] sm:$0xff]  ;;  %v52_v16 = vsel %vm47_vm0, %v37_v11, 0 }
   0x4   :  { %v45_v10 = vsel %vm43_vm1, %v14_v7, 0  ;;  %v1745_v13 = vsub.f32 %v29_v1, %v1724_v4  ;;  %v1748_v14 = vsub.f32 %v22_v2, %v1726_v5  ;;  %v23_v17 = vld [vmem:[%s2350_s0 + $0x40] sm:$0xff]  ;;  %v1762_v20 = vand.u32 4294901760, %v52_v16  ;;  %v16_v37 = vld [vmem:[%s2350_s0 + $0x8] sm:$0xff]  ;;  %v38_v52 = vld [vmem:[%s2350_s0 + $0xb8] sm:$0x1] }
   0x5   :  { %v1750_v15 = vand.u32 4294901760, %v45_v10  ;;  %82 = vmatpush.msra.mxu0 %v1734_v8  ;;  %v111_v18 = vsub.f32 %v49_v3, %v1734_v8  ;;  %182 = vmatpush.msra.mxu3 %v1734_v8  ;;  %v1760_v19 = vsub.f32 %v15_v6, %v1736_v9  ;;  %v1764_v21 = vand.u32 4294901760, %v30_v12  ;;  %v31_v58 = vld [vmem:[%s2350_s0 + $0x80] sm:$0xff]  ;;  %v24_v62 = vld [vmem:[%s2350_s0 + $0x48] sm:$0xff]  ;;  %v17_v2 = vld [vmem:[%s2350_s0 + $0x10] sm:$0xff] }
   0x6   :  { %v118_v22 = vand.u32 4294901760, %v1745_v13  ;;  %v124_v24 = vand.u32 4294901760, %v1748_v14  ;;  %v1771_v25 = vand.u32 4294901760, %v23_v17  ;;  %v1775_v27 = vsub.f32 %v52_v16, %v1762_v20  ;;  %v39_v63 = vld [vmem:[%s2350_s0 + $0xc0] sm:$0x1] }
   0x7   :  { %v1768_v23 = vsub.f32 %v45_v10, %v1750_v15  ;;  %153 = vmatpush.msra.mxu2 %v111_v18  ;;  %84 = vmatpush.msra.mxu0 %v1724_v4  ;;  %v112_v26 = vand.u32 4294901760, %v111_v18  ;;  %v130_v28 = vand.u32 4294901760, %v1760_v19  ;;  %v1779_v29 = vsub.f32 %v30_v12, %v1764_v21  ;;  %v25_v10 = vld [vmem:[%s2350_s0 + $0x50] sm:$0xff] }
   0x8   :  { %184 = vmatpush.msra.mxu3 %v1724_v4  ;;  %v119_v30 = vsub.f32 %v1745_v13, %v118_v22  ;;  %v1787_v32 = vsub.f32 %v23_v17, %v1771_v25  ;;  %v125_v34 = vsub.f32 %v1748_v14, %v124_v24  ;;  %v297_v35 = vand.u32 4294901760, %v1775_v27 }
   0x9   :  { %v1784_v31 = vand.u32 4294901760, %v1768_v23  ;;  %156 = vmatpush.msra.mxu2 %v1745_v13  ;;  %86 = vmatpush.msra.mxu0 %v1726_v5  ;;  %v113_v33 = vsub.f32 %v111_v18, %v112_v26  ;;  %v303_v36 = vand.u32 4294901760, %v1779_v29  ;;  %v131_v39 = vsub.f32 %v1760_v19, %v130_v28  ;;  %v18_v13 = vld [vmem:[%s2350_s0 + $0x18] sm:$0xff] }
   0xa   :  { %186 = vmatpush.msra.mxu3 %v1726_v5  ;;  %v309_v40 = vand.u32 4294901760, %v1787_v32  ;;  %v120_v42 = vand.u32 4294901760, %v119_v30  ;;  %v298_v43 = vsub.f32 %v1775_v27, %v297_v35  ;;  %v1813_v46 = vand.u32 4294901760, %v16_v37 }
   0xb   :  { %v92_v38 = vsub.f32 %v1768_v23, %v1784_v31  ;;  %v114_v41 = vand.u32 4294901760, %v113_v33  ;;  %159 = vmatpush.msra.mxu2 %v1748_v14  ;;  %88 = vmatpush.msra.mxu0 %v1736_v9  ;;  %v304_v44 = vsub.f32 %v1779_v29, %v303_v36  ;;  %v126_v47 = vand.u32 4294901760, %v125_v34 }
   0xc   :  { %188 = vmatpush.msra.mxu3 %v1736_v9  ;;  %v299_v48 = vand.u32 4294901760, %v298_v43  ;;  %v310_v49 = vsub.f32 %v1787_v32, %v309_v40  ;;  %v1822_v51 = vsub.f32 %v16_v37, %v1813_v46  ;;  %v132_v53 = vand.u32 4294901760, %v131_v39 }
   0xd   :  { %v1811_v45 = vand.u32 4294901760, %v92_v38  ;;  %211 = vmatpush.msrb.mxu0 %v112_v26  ;;  %115 = vmatpush.msra.mxu1 %v114_v41  ;;  %v305_v50 = vand.u32 4294901760, %v304_v44  ;;  %v55_v56 = vsel %vm47_vm0, %v38_v52, 0  ;;  %v1842_v61 = vand.u32 4294901760, %v31_v58 }
   0xe   :  { %162 = vmatpush.msra.mxu2 %v1760_v19  ;;  %192 = vmatmul.f32.vlgmr.msra.gmra.mxu3 %v1784_v31  ;;  %v315_v54 = vand.u32 4294901760, %v1822_v51  ;;  %v311_v55 = vand.u32 4294901760, %v310_v49  ;;  %v1838_v60 = vand.u32 4294901760, %v55_v56  ;;  %v1858_v1 = vand.u32 4294901760, %v24_v62 }
   0xf   :  { %94 = vmatmul.f32.vlgmr.msra.gmra.mxu0 %v1811_v45  ;;  %165 = vmatmul.f32.vlgmr.msra.gmra.mxu2 %v1768_v23  ;;  %v58_v3 = vsel %vm47_vm0, %v39_v63, 0  ;;  %v1879_v7 = vand.u32 4294901760, %v17_v2  ;;  %v1912_v18 = vand.u32 4294901760, %v25_v10  ;;  %v1692_v41 = vmov 0  }
  0x10   :  { %121 = vmatpush.msra.mxu1 %v120_v42  ;;  %267 = vmatpush.msrb.mxu2 %v1762_v20  ;;  %v316_v57 = vsub.f32 %v1822_v51, %v315_v54  ;;  %v1854_v0 = vsub.f32 %v55_v56, %v1838_v60  ;;  %v1371_v42 = vld [vmem:[%s2352_s2] sm:$0x3f] }
  0x11   :  { %300 = vmatpush.msrb.mxu3 %v299_v48  ;;  %215 = vmatpush.msrb.mxu0 %v118_v22  ;;  %v1907_v16 = vsub.f32 %v17_v2, %v1879_v7 }
  0x12   :  { %127 = vmatpush.msra.mxu1 %v126_v47  ;;  %269 = vmatpush.msrb.mxu2 %v1764_v21  ;;  %v317_v59 = vand.u32 4294901760, %v316_v57  ;;  %v482_v6 = vand.u32 4294901760, %v1854_v0  ;;  %v40_v47 = vld [vmem:[%s2350_s0 + $0xc8] sm:$0x1] }
  0x13   :  { %306 = vmatpush.msrb.mxu3 %v305_v50  ;;  %219 = vmatpush.msrb.mxu0 %v124_v24  ;;  %v1928_v24 = vand.u32 4294901760, %v18_v13 }
  0x14   :  { %133 = vmatpush.msra.mxu1 %v132_v53  ;;  %271 = vmatpush.msrb.mxu2 %v1771_v25  ;;  %v483_v14 = vsub.f32 %v1854_v0, %v482_v6  ;;  %v33_v53 = vld [vmem:[%s2350_s0 + $0x90] sm:$0xff] }
  0x15   :  { %135 = vmatmul.f32.vlgmr.msra.gmra.mxu1 %v1750_v15  ;;  %312 = vmatpush.msrb.mxu3 %v311_v55  ;;  %v1951_v34 = vsub.f32 %v18_v13, %v1928_v24  ;;  %v26_v55 = vld [vmem:[%s2350_s0 + $0x58] sm:$0xff]  ;;  %v2007_v56 = vand.u32 4294901760, %v33_v53 }
  0x16   :  { %242 = vmatpush.msrb.mxu1 %v1734_v8  ;;  %273 = vmatpush.msrb.mxu2 %v1813_v46  ;;  %v1881_v8 = vand.u32 4294901760, %v58_v3 }
  0x17   :  { %223 = vmatpush.msrb.mxu0 %v130_v28  ;;  %318 = vmatpush.msrb.mxu3 %v317_v59  ;;  %v500_v28 = vand.u32 4294901760, %v1907_v16  ;;  %v19_v59 = vld [vmem:[%s2350_s0 + $0x20] sm:$0xff] }
  0x18   :  { %244 = vmatpush.msrb.mxu1 %v1724_v4  ;;  %225 = vmatmul.f32.vlgmr.msrb.gmra.mxu0 %v1750_v15  ;;  %v1868_v4 = vsub.f32 %v31_v58, %v1842_v61  ;;  %v1910_v17 = vsub.f32 %v58_v3, %v1881_v8  ;;  %v2014_v58 = vand.u32 4294901760, %v26_v55 }
  0x19   :  { %279 = vmatmul.f32.vlgmr.msrb.gmra.mxu2 %v1811_v45  ;;  %320 = vmatmul.f32.vlgmr.msrb.gmra.mxu3 %v1750_v15 }
  0x1a   :  { %246 = vmatpush.msrb.mxu1 %v1726_v5  ;;  %396 = vmatpush.msra.mxu2 %v297_v35  ;;  %v32_v5 = vld [vmem:[%s2350_s0 + $0x88] sm:$0xff]  ;;  %v488_v11 = vand.u32 4294901760, %v1868_v4  ;;  %v2048_v3 = vsub.f32 %v26_v55, %v2014_v58 }
  0x1b   :  { %338 = vmatpush.msra.mxu0 %v1775_v27  ;;  %427 = vmatpush.msra.mxu3 %v1762_v20  ;;  %v1895_v12 = vand.u32 4294901760, %v32_v5  ;;  %v667_v27 = vand.u32 4294901760, %v1910_v17 }
  0x1c   :  { %248 = vmatpush.msrb.mxu1 %v1736_v9  ;;  %400 = vmatpush.msra.mxu2 %v303_v36  ;;  %v1886_v9 = vsub.f32 %v24_v62, %v1858_v1  ;;  %v501_v36 = vsub.f32 %v1907_v16, %v500_v28  ;;  %v34_v62 = vld [vmem:[%s2350_s0 + $0x98] sm:$0xff]  ;;  %v864_v13 = vand.u32 4294901760, %v2048_v3 }
  0x1d   :  { %341 = vmatpush.msra.mxu0 %v1779_v29  ;;  %429 = vmatpush.msra.mxu3 %v1764_v21  ;;  %v1926_v22 = vsub.f32 %v32_v5, %v1895_v12  ;;  %v1940_v29 = vsub.f32 %v25_v10, %v1912_v18  ;;  %v668_v35 = vsub.f32 %v1910_v17, %v667_v27  ;;  %v2055_v5 = vand.u32 4294901760, %v34_v62 }
  0x1e   :  { %250 = vmatmul.f32.vlgmr.msrb.gmra.mxu1 %v1750_v15  ;;  %404 = vmatpush.msra.mxu2 %v309_v40  ;;  %v494_v19 = vand.u32 4294901760, %v1886_v9  ;;  %v685_v40 = vand.u32 4294901760, %v1951_v34  ;;  %v502_v44 = vand.u32 4294901760, %v501_v36 }
  0x1f   :  { %367 = vmatpush.msra.mxu1 %v1762_v20  ;;  %344 = vmatpush.msra.mxu0 %v1787_v32  ;;  %v41_v20 = vld [vmem:[%s2350_s0 + $0xd0] sm:$0x1]  ;;  %v673_v33 = vand.u32 4294901760, %v1926_v22  ;;  %v679_v37 = vand.u32 4294901760, %v1940_v29  ;;  %v669_v43 = vand.u32 4294901760, %v668_v35 }
  0x20   :  { %431 = vmatpush.msra.mxu3 %v1771_v25  ;;  %408 = vmatpush.msra.mxu2 %v315_v54  ;;  %v1931_v26 = vsel %vm47_vm0, %v41_v20, 0  ;;  %v495_v30 = vsub.f32 %v1886_v9, %v494_v19  ;;  %v686_v49 = vsub.f32 %v1951_v34, %v685_v40 }
  0x21   :  { %369 = vmatpush.msra.mxu1 %v1764_v21  ;;  %347 = vmatpush.msra.mxu0 %v1822_v51  ;;  %v489_v21 = vsub.f32 %v1868_v4, %v488_v11  ;;  %v674_v39 = vsub.f32 %v1926_v22, %v673_v33  ;;  %v61_v51 = vsel %vm47_vm0, %v40_v47, 0 }
  0x22   :  { %433 = vmatpush.msra.mxu3 %v1813_v46  ;;  %350 = vmatmul.f32.vlgmr.msra.gmra.mxu0 %v1768_v23  ;;  %v496_v38 = vand.u32 4294901760, %v495_v30  ;;  %v687_v52 = vand.u32 4294901760, %v686_v49  ;;  %v1998_v54 = vand.u32 4294901760, %v61_v51 }
  0x23   :  { %371 = vmatpush.msra.mxu1 %v1771_v25  ;;  %410 = vmatmul.f32.vlgmr.msra.gmra.mxu2 %v1750_v15  ;;  %v484_v25 = vand.u32 4294901760, %v483_v14  ;;  %v490_v32 = vand.u32 4294901760, %v489_v21  ;;  %v675_v48 = vand.u32 4294901760, %v674_v39  ;;  %v2085_v14 = vsub.f32 %v34_v62, %v2055_v5  ;;  %v35_v39 = vld [vmem:[%s2350_s0 + $0xa0] sm:$0xff] }
  0x24   :  { %435 = vmatmul.f32.vlgmr.msra.gmra.mxu3 %v1750_v15  ;;  %523 = vmatpush.msrb.mxu2 %v1854_v0  ;;  %v2012_v57 = vsub.f32 %v61_v51, %v1998_v54  ;;  %v2038_v0 = vand.u32 4294901760, %v19_v59  ;;  %v865_v21 = vsub.f32 %v2048_v3, %v864_v13 }
  0x25   :  { %452 = vmatpush.msrb.mxu0 %v1838_v60  ;;  %552 = vmatpush.msrb.mxu3 %v1838_v60 }
  0x26   :  { %373 = vmatpush.msra.mxu1 %v1813_v46  ;;  %526 = vmatpush.msrb.mxu2 %v1868_v4  ;;  %v680_v46 = vsub.f32 %v1940_v29, %v679_v37  ;;  %v852_v2 = vand.u32 4294901760, %v2012_v57  ;;  %v27_v4 = vld [vmem:[%s2350_s0 + $0x60] sm:$0xff] }
  0x27   :  { %454 = vmatpush.msrb.mxu0 %v1842_v61  ;;  %554 = vmatpush.msrb.mxu3 %v1842_v61 }
  0x28   :  { %377 = vmatmul.f32.vlgmr.msra.gmra.mxu1 %v1784_v31  ;;  %529 = vmatpush.msrb.mxu2 %v1886_v9  ;;  %v681_v50 = vand.u32 4294901760, %v680_v46  ;;  %v2067_v9 = vsub.f32 %v19_v59, %v2038_v0 }
  0x29   :  { %485 = vmatpush.msrb.mxu1 %v484_v25  ;;  %456 = vmatpush.msrb.mxu0 %v1858_v1 }
  0x2a   :  { %556 = vmatpush.msrb.mxu3 %v1858_v1  ;;  %532 = vmatpush.msrb.mxu2 %v1907_v16 }
  0x2b   :  { %491 = vmatpush.msrb.mxu1 %v490_v32  ;;  %458 = vmatpush.msrb.mxu0 %v1879_v7 }
  0x2c   :  { %558 = vmatpush.msrb.mxu3 %v1879_v7  ;;  %1659 = vset.pattern.permute.xlu0 %v1692_v41 }
  0x2d   :  { %464 = vmatmul.f32.vlgmr.msrb.gmra.mxu0 %v1811_v45  ;;  %497 = vmatpush.msrb.mxu1 %v496_v38 }
  0x2e   :  { %535 = vmatmul.f32.vlgmr.msrb.gmra.mxu2 %v1768_v23  ;;  %562 = vmatmul.f32.vlgmr.msrb.gmra.mxu3 %v1784_v31 }
  0x2f   :  { %637 = vmatpush.msra.mxu2 %v1881_v8  ;;  %1374 = vperm.xlu0 %1659, %v1371_v42   ;;  %v28_v42 = vld [vmem:[%s2350_s0 + $0x68] sm:$0xff] }
  0x30   :  { %581 = vmatpush.msra.mxu0 %v482_v6  ;;  %670 = vmatpush.msra.mxu3 %v669_v43  ;;  %v2160_v43 = vand.u32 4294901760, %v35_v39  ;;  %v2171_v47 = vand.u32 4294901760, %v28_v42 }
  0x31   :  { %503 = vmatpush.msrb.mxu1 %v502_v44  ;;  %639 = vmatpush.msra.mxu2 %v1895_v12  ;;  %v21_v44 = vld [vmem:[%s2350_s0 + $0x30] sm:$0xff] }
  0x32   :  { %585 = vmatpush.msra.mxu0 %v488_v11  ;;  %676 = vmatpush.msra.mxu3 %v675_v48  ;;  %v853_v11 = vsub.f32 %v2012_v57, %v852_v2  ;;  %v1227_v48 = vsub.f32 %v35_v39, %v2160_v43  ;;  %v2178_v49 = vand.u32 4294901760, %v21_v44  ;;  %v1233_v51 = vsub.f32 %v28_v42, %v2171_v47 }
  0x33   :  { %505 = vmatmul.f32.vlgmr.msrb.gmra.mxu1 %v1750_v15  ;;  %641 = vmatpush.msra.mxu2 %v1912_v18 }
  0x34   :  { %612 = vmatpush.msra.mxu1 %v1838_v60  ;;  %589 = vmatpush.msra.mxu0 %v494_v19  ;;  %v42_v60 = vld [vmem:[%s2350_s0 + $0xd8] sm:$0x1]  ;;  %v870_v19 = vand.u32 4294901760, %v2067_v9  ;;  %v1234_v55 = vand.u32 4294901760, %v1233_v51 }
  0x35   :  { %682 = vmatpush.msra.mxu3 %v681_v50  ;;  %643 = vmatpush.msra.mxu2 %v1928_v24  ;;  %v2034_v63 = vsel %vm47_vm0, %v42_v60, 0 }
  0x36   :  { %614 = vmatpush.msra.mxu1 %v1842_v61  ;;  %593 = vmatpush.msra.mxu0 %v500_v28  ;;  %v2028_v61 = vsub.f32 %v33_v53, %v2007_v56  ;;  %v2151_v41 = vand.u32 4294901760, %v2034_v63  ;;  %v1239_v53 = vsub.f32 %v21_v44, %v2178_v49  ;;  %v1235_v59 = vsub.f32 %v1233_v51, %v1234_v55 }
  0x37   :  { %688 = vmatpush.msra.mxu3 %v687_v52  ;;  %595 = vmatmul.f32.vlgmr.msra.gmra.mxu0 %v1750_v15  ;;  %v1228_v52 = vand.u32 4294901760, %v1227_v48 }
  0x38   :  { %616 = vmatpush.msra.mxu1 %v1858_v1  ;;  %649 = vmatmul.f32.vlgmr.msra.gmra.mxu2 %v1811_v45  ;;  %v2041_v1 = vand.u32 4294901760, %v1931_v26  ;;  %v858_v6 = vand.u32 4294901760, %v2028_v61  ;;  %v2169_v46 = vsub.f32 %v2034_v63, %v2151_v41  ;;  %v1236_v62 = vand.u32 4294901760, %v1235_v59 }
  0x39   :  { %690 = vmatmul.f32.vlgmr.msra.gmra.mxu3 %v1750_v15  ;;  %766 = vmatpush.msrb.mxu2 %v667_v27 }
  0x3a   :  { %708 = vmatpush.msrb.mxu0 %v1910_v17  ;;  %797 = vmatpush.msrb.mxu3 %v1881_v8  ;;  %v2071_v10 = vsub.f32 %v1931_v26, %v2041_v1  ;;  %v1222_v50 = vand.u32 4294901760, %v2169_v46 }
  0x3b   :  { %618 = vmatpush.msra.mxu1 %v1879_v7  ;;  %770 = vmatpush.msrb.mxu2 %v673_v33  ;;  %v20_v7 = vld [vmem:[%s2350_s0 + $0x28] sm:$0xff] }
  0x3c   :  { %711 = vmatpush.msrb.mxu0 %v1926_v22  ;;  %799 = vmatpush.msrb.mxu3 %v1895_v12  ;;  %v2087_v16 = vand.u32 4294901760, %v20_v7  ;;  %v1037_v17 = vand.u32 4294901760, %v2071_v10  ;;  %v1043_v22 = vand.u32 4294901760, %v2085_v14 }
  0x3d   :  { %620 = vmatmul.f32.vlgmr.msra.gmra.mxu1 %v1750_v15  ;;  %774 = vmatpush.msrb.mxu2 %v679_v37 }
  0x3e   :  { %737 = vmatpush.msrb.mxu1 %v1881_v8  ;;  %714 = vmatpush.msrb.mxu0 %v1940_v29  ;;  %v2073_v8 = vand.u32 4294901760, %v27_v4  ;;  %v2110_v26 = vsub.f32 %v20_v7, %v2087_v16  ;;  %v1038_v27 = vsub.f32 %v2071_v10, %v1037_v17  ;;  %v866_v29 = vand.u32 4294901760, %v865_v21 }
  0x3f   :  { %801 = vmatpush.msrb.mxu3 %v1912_v18  ;;  %778 = vmatpush.msrb.mxu2 %v685_v40  ;;  %v1044_v30 = vsub.f32 %v2085_v14, %v1043_v22 }
  0x40   :  { %739 = vmatpush.msrb.mxu1 %v1895_v12  ;;  %717 = vmatpush.msrb.mxu0 %v1951_v34  ;;  %v859_v12 = vsub.f32 %v2028_v61, %v858_v6  ;;  %v2099_v20 = vsub.f32 %v27_v4, %v2073_v8  ;;  %v1055_v32 = vand.u32 4294901760, %v2110_v26  ;;  %v1039_v33 = vand.u32 4294901760, %v1038_v27 }
  0x41   :  { %803 = vmatpush.msrb.mxu3 %v1928_v24  ;;  %720 = vmatmul.f32.vlgmr.msrb.gmra.mxu0 %v1768_v23  ;;  %v1045_v36 = vand.u32 4294901760, %v1044_v30 }
  0x42   :  { %741 = vmatpush.msrb.mxu1 %v1912_v18  ;;  %780 = vmatmul.f32.vlgmr.msrb.gmra.mxu2 %v1750_v15  ;;  %v854_v18 = vand.u32 4294901760, %v853_v11  ;;  %v860_v25 = vand.u32 4294901760, %v859_v12  ;;  %v1049_v28 = vand.u32 4294901760, %v2099_v20  ;;  %v1056_v37 = vsub.f32 %v2110_v26, %v1055_v32 }
  0x43   :  { %805 = vmatmul.f32.vlgmr.msrb.gmra.mxu3 %v1750_v15  ;;  %893 = vmatpush.msra.mxu2 %v2012_v57  ;;  %v1240_v57 = vand.u32 4294901760, %v1239_v53 }
  0x44   :  { %822 = vmatpush.msra.mxu0 %v1998_v54  ;;  %922 = vmatpush.msra.mxu3 %v1998_v54  ;;  %v1050_v35 = vsub.f32 %v2099_v20, %v1049_v28  ;;  %v1057_v40 = vand.u32 4294901760, %v1056_v37 }
  0x45   :  { %743 = vmatpush.msrb.mxu1 %v1928_v24  ;;  %896 = vmatpush.msra.mxu2 %v2028_v61  ;;  %v871_v24 = vsub.f32 %v2067_v9, %v870_v19  ;;  %v1241_v61 = vsub.f32 %v1239_v53, %v1240_v57 }
  0x46   :  { %824 = vmatpush.msra.mxu0 %v2007_v56  ;;  %924 = vmatpush.msra.mxu3 %v2007_v56  ;;  %v1051_v38 = vand.u32 4294901760, %v1050_v35 }
  0x47   :  { %747 = vmatmul.f32.vlgmr.msrb.gmra.mxu1 %v1784_v31  ;;  %899 = vmatpush.msra.mxu2 %v2048_v3  ;;  %v872_v34 = vand.u32 4294901760, %v871_v24  ;;  %v1242_v63 = vand.u32 4294901760, %v1241_v61 }
  0x48   :  { %855 = vmatpush.msra.mxu1 %v854_v18  ;;  %826 = vmatpush.msra.mxu0 %v2014_v58 }
  0x49   :  { %926 = vmatpush.msra.mxu3 %v2014_v58  ;;  %902 = vmatpush.msra.mxu2 %v2067_v9 }
  0x4a   :  { %861 = vmatpush.msra.mxu1 %v860_v25  ;;  %828 = vmatpush.msra.mxu0 %v2038_v0 }
  0x4b   :  { %928 = vmatpush.msra.mxu3 %v2038_v0  ;;  %834 = vmatmul.f32.vlgmr.msra.gmra.mxu0 %v1811_v45 }
  0x4c   :  { %867 = vmatpush.msra.mxu1 %v866_v29  ;;  %905 = vmatmul.f32.vlgmr.msra.gmra.mxu2 %v1768_v23 }
  0x4d   :  { %932 = vmatmul.f32.vlgmr.msra.gmra.mxu3 %v1784_v31  ;;  %1007 = vmatpush.msrb.mxu2 %v2041_v1 }
  0x4e   :  { %951 = vmatpush.msrb.mxu0 %v852_v2  ;;  %1040 = vmatpush.msrb.mxu3 %v1039_v33 }
  0x4f   :  { %873 = vmatpush.msra.mxu1 %v872_v34  ;;  %1009 = vmatpush.msrb.mxu2 %v2055_v5 }
  0x50   :  { %955 = vmatpush.msrb.mxu0 %v858_v6  ;;  %1046 = vmatpush.msrb.mxu3 %v1045_v36 }
  0x51   :  { %875 = vmatmul.f32.vlgmr.msra.gmra.mxu1 %v1750_v15  ;;  %1011 = vmatpush.msrb.mxu2 %v2073_v8 }
  0x52   :  { %982 = vmatpush.msrb.mxu1 %v1998_v54  ;;  %959 = vmatpush.msrb.mxu0 %v864_v13  ;;  %v1223_v54 = vsub.f32 %v2169_v46, %v1222_v50 }
  0x53   :  { %1052 = vmatpush.msrb.mxu3 %v1051_v38  ;;  %1013 = vmatpush.msrb.mxu2 %v2087_v16 }
  0x54   :  { %984 = vmatpush.msrb.mxu1 %v2007_v56  ;;  %963 = vmatpush.msrb.mxu0 %v870_v19  ;;  %v1229_v56 = vsub.f32 %v1227_v48, %v1228_v52 }
  0x55   :  { %1058 = vmatpush.msrb.mxu3 %v1057_v40  ;;  %965 = vmatmul.f32.vlgmr.msrb.gmra.mxu0 %v1750_v15 }
  0x56   :  { %986 = vmatpush.msrb.mxu1 %v2014_v58  ;;  %1019 = vmatmul.f32.vlgmr.msrb.gmra.mxu2 %v1811_v45  ;;  %v1224_v58 = vand.u32 4294901760, %v1223_v54  ;;  %v1230_v60 = vand.u32 4294901760, %v1229_v56 }
  0x57   :  { %1060 = vmatmul.f32.vlgmr.msrb.gmra.mxu3 %v1750_v15  ;;  %1136 = vmatpush.msra.mxu2 %v1037_v17 }
  0x58   :  { %1078 = vmatpush.msra.mxu0 %v2071_v10  ;;  %988 = vmatpush.msrb.mxu1 %v2038_v0 }
  0x59   :  { %1167 = vmatpush.msra.mxu3 %v2041_v1  ;;  %1140 = vmatpush.msra.mxu2 %v1043_v22 }
  0x5a   :  { %1081 = vmatpush.msra.mxu0 %v2085_v14  ;;  %990 = vmatmul.f32.vlgmr.msrb.gmra.mxu1 %v1750_v15 }
  0x5b   :  { %1169 = vmatpush.msra.mxu3 %v2055_v5  ;;  %1107 = vmatpush.msra.mxu1 %v2041_v1 }
  0x5c   :  { %1144 = vmatpush.msra.mxu2 %v1049_v28  ;;  %1084 = vmatpush.msra.mxu0 %v2099_v20 }
  0x5d   :  { %1171 = vmatpush.msra.mxu3 %v2073_v8  ;;  %1109 = vmatpush.msra.mxu1 %v2055_v5 }
  0x5e   :  { %1148 = vmatpush.msra.mxu2 %v1055_v32  ;;  %1087 = vmatpush.msra.mxu0 %v2110_v26 }
  0x5f   :  { %1150 = vmatmul.f32.vlgmr.msra.gmra.mxu2 %v1750_v15  ;;  %1090 = vmatmul.f32.vlgmr.msra.gmra.mxu0 %v1768_v23 }
  0x60   :  { %1111 = vmatpush.msra.mxu1 %v2073_v8  ;;  %1173 = vmatpush.msra.mxu3 %v2087_v16 }
  0x61   :  { %1263 = vmatpush.msrb.mxu2 %v2169_v46  ;;  %1175 = vmatmul.f32.vlgmr.msra.gmra.mxu3 %v1750_v15 }
  0x62   :  { %1113 = vmatpush.msra.mxu1 %v2087_v16  ;;  %1192 = vmatpush.msrb.mxu0 %v2151_v41 }
  0x63   :  { %1266 = vmatpush.msrb.mxu2 %v1227_v48  ;;  %1292 = vmatpush.msrb.mxu3 %v2151_v41 }
  0x64   :  { %1117 = vmatmul.f32.vlgmr.msra.gmra.mxu1 %v1784_v31  ;;  %1194 = vmatpush.msrb.mxu0 %v2160_v43 }
  0x65   :  { %1225 = vmatpush.msrb.mxu1 %v1224_v58  ;;  %1269 = vmatpush.msrb.mxu2 %v1233_v51 }
  0x66   :  { %1294 = vmatpush.msrb.mxu3 %v2160_v43  ;;  %1196 = vmatpush.msrb.mxu0 %v2171_v47 }
  0x67   :  { %1231 = vmatpush.msrb.mxu1 %v1230_v60  ;;  %1272 = vmatpush.msrb.mxu2 %v1239_v53 }
  0x68   :  { %1296 = vmatpush.msrb.mxu3 %v2171_v47  ;;  %1198 = vmatpush.msrb.mxu0 %v2178_v49 }
  0x69   :  { %1237 = vmatpush.msrb.mxu1 %v1236_v62  ;;  %1275 = vmatmul.f32.vlgmr.msrb.gmra.mxu2 %v1768_v23 }
  0x6a   :  { %1298 = vmatpush.msrb.mxu3 %v2178_v49  ;;  %1204 = vmatmul.f32.vlgmr.msrb.gmra.mxu0 %v1811_v45 }
  0x6b   :  { %1243 = vmatpush.msrb.mxu1 %v1242_v63  ;;  %1302 = vmatmul.f32.vlgmr.msrb.gmra.mxu3 %v1784_v31 }
  0x6c   :  { %1321 = vmatpush.msra.mxu0 %v1222_v50  ;;  %1245 = vmatmul.f32.vlgmr.msrb.gmra.mxu1 %v1750_v15 }
  0x6d   :  { %1352 = vmatpush.msra.mxu1 %v2151_v41 }
  0x6e   :  { %1325 = vmatpush.msra.mxu0 %v1228_v52 }
  0x6f   :  { %1354 = vmatpush.msra.mxu1 %v2160_v43 }
  0x70   :  { %1329 = vmatpush.msra.mxu0 %v1234_v55 }
  0x71   :  { %1356 = vmatpush.msra.mxu1 %v2171_v47 }
  0x72   :  { %1333 = vmatpush.msra.mxu0 %v1240_v57 }
  0x73   :  { %1335 = vmatmul.f32.vlgmr.msra.gmra.mxu0 %v1750_v15  ;;  %1358 = vmatpush.msra.mxu1 %v2178_v49 }
  0x74   :  { %1360 = vmatmul.f32.vlgmr.msra.gmra.mxu1 %v1750_v15 }
  0x8c   :  { %v95_v23 = vpop.f32.mrf.mxu0 }
  0x91   :  { %v193_v0 = vpop.f32.mrf.mxu3 }
  0x92   :  { %v136_v31 = vpop.f32.mrf.mxu1  ;;  %v166_v45 = vpop.f32.mrf.mxu2 }
  0x93   :  { %v137_v27 = vadd.f32 %v136_v31, %v95_v23 }
  0x95   :  { %v226_v1 = vpop.f32.mrf.mxu0  ;;  %v167_v30 = vadd.f32 %v166_v45, %v137_v27 }
  0x97   :  { %v194_v40 = vadd.f32 %v193_v0, %v167_v30 }
  0x99   :  { %v227_v49 = vadd.f32 %v226_v1, %v194_v40  ;;  %v1693_v40 = vmov 4800.0  }
  0x9a   :  { %1660 = vrcp.f32 %v1693_v40 }
  0x9b   :  { %v251_v2 = vpop.f32.mrf.mxu1 }
  0x9c   :  { %v280_v3 = vpop.f32.mrf.mxu2  ;;  %v321_v4 = vpop.f32.mrf.mxu3  ;;  %v252_v58 = vadd.f32 %v251_v2, %v227_v49 }
  0x9d   :  { %v322_v28 = vadd.f32 %v321_v4, %v280_v3 }
  0x9e   :  { %vm1364_vm3 = vcmp.gt.f32.partialorder %v252_v58, 0.0 }
  0x9f   :  { %v351_v5 = vpop.f32.mrf.mxu0 }
  0xa0   :  { %v352_v32 = vadd.f32 %v351_v5, %v322_v28 }
  0xa1   :  { %v1375_v61 = vpop.permute.xlu0 %1374 }
  0xa2   :  { %v1377_v45 = vmul.f32 %v1375_v61, %v252_v58 }
  0xa5   :  { %v378_v6 = vpop.f32.mrf.mxu1 }
  0xa6   :  { %v411_v7 = vpop.f32.mrf.mxu2  ;;  %v379_v37 = vadd.f32 %v378_v6, %v352_v32 }
  0xa7   :  { %v436_v9 = vpop.f32.mrf.mxu3 }
  0xa8   :  { %v412_v47 = vadd.f32 %v411_v7, %v379_v37 }
  0xaa   :  { %v465_v10 = vpop.f32.mrf.mxu0  ;;  %v437_v54 = vadd.f32 %v436_v9, %v412_v47  ;;  %v1384_v9 = vsel %vm1364_vm3, %v252_v58, %v1377_v45 }
  0xac   :  { %v1378_v63 = vmul.f32 %v1375_v61, %v437_v54  ;;  %vm1365_vm2 = vcmp.gt.f32.partialorder %v437_v54, 0.0 }
  0xae   :  { %v2229_v4 = vsel %vm1365_vm2, %v437_v54, %v1378_v63 }
  0xb0   :  { %v506_v8 = vpop.f32.mrf.mxu1 }
  0xb1   :  { %v536_v11 = vpop.f32.mrf.mxu2  ;;  %v563_v13 = vpop.f32.mrf.mxu3  ;;  %v507_v29 = vadd.f32 %v506_v8, %v465_v10 }
  0xb3   :  { %v537_v33 = vadd.f32 %v536_v11, %v507_v29  ;;  %v1393_v11 = vsel %vm1391_vm6, %v2229_v4, 0.0 }
  0xb4   :  { %v596_v14 = vpop.f32.mrf.mxu0 }
  0xb5   :  { %v564_v41 = vadd.f32 %v563_v13, %v537_v33 }
  0xb7   :  { %v597_v50 = vadd.f32 %v596_v14, %v564_v41  ;;  %v1661_v41 = vpop.eup %1660 }
  0xb8   :  { %vm1420_vm11 = vweird.f32 %v1661_v41 }
  0xba   :  { %v621_v16 = vpop.f32.mrf.mxu1 }
  0xbb   :  { %v650_v12 = vpop.f32.mrf.mxu2  ;;  %v622_v59 = vadd.f32 %v621_v16, %v597_v50 }
  0xbc   :  { %v691_v15 = vpop.f32.mrf.mxu3 }
  0xbd   :  { %v692_v34 = vadd.f32 %v691_v15, %v650_v12  ;;  %v1379_v0 = vmul.f32 %v1375_v61, %v622_v59  ;;  %vm1366_vm4 = vcmp.gt.f32.partialorder %v622_v59, 0.0  ;;  %v1392_v15 = vsel %vm1391_vm6, %v1384_v9, 0.0 }
  0xbe   :  { %v721_v17 = vpop.f32.mrf.mxu0 }
  0xbf   :  { %v722_v42 = vadd.f32 %v721_v17, %v692_v34  ;;  %v1386_v10 = vsel %vm1366_vm4, %v622_v59, %v1379_v0 }
  0xc0   :  { %v1395_v17 = vsel %vm1391_vm6, %v1386_v10, 0.0 }
  0xc4   :  { %v748_v19 = vpop.f32.mrf.mxu1 }
  0xc5   :  { %v781_v20 = vpop.f32.mrf.mxu2  ;;  %v749_v48 = vadd.f32 %v748_v19, %v722_v42  ;;  %v1416_v42 = vmul.f32 4800.0, %v1661_v41 }
  0xc6   :  { %v806_v18 = vpop.f32.mrf.mxu3 }
  0xc7   :  { %v782_v55 = vadd.f32 %v781_v20, %v749_v48  ;;  %v1394_v20 = vadd.f32 %v1393_v11, %v1392_v15 }
  0xc8   :  { %v835_v21 = vpop.f32.mrf.mxu0 }
  0xc9   :  { %v807_v23 = vadd.f32 %v806_v18, %v782_v55 }
  0xcb   :  { %v1380_v5 = vmul.f32 %v1375_v61, %v807_v23  ;;  %vm1367_vm5 = vcmp.gt.f32.partialorder %v807_v23, 0.0 }
  0xcd   :  { %v1387_v14 = vsel %vm1367_vm5, %v807_v23, %v1380_v5 }
  0xce   :  { %v876_v22 = vpop.f32.mrf.mxu1 }
  0xcf   :  { %v906_v26 = vpop.f32.mrf.mxu2  ;;  %v877_v35 = vadd.f32 %v876_v22, %v835_v21 }
  0xd0   :  { %v933_v25 = vpop.f32.mrf.mxu3 }
  0xd1   :  { %v907_v43 = vadd.f32 %v906_v26, %v877_v35  ;;  %v1397_v26 = vsel %vm1391_vm6, %v1387_v14, 0.0 }
  0xd2   :  { %v966_v24 = vpop.f32.mrf.mxu0 }
  0xd3   :  { %v934_v51 = vadd.f32 %v933_v25, %v907_v43  ;;  %v1396_v25 = vadd.f32 %v1395_v17, %v1394_v20  ;;  %v1417_v43 = vsub.f32 1.0, %v1416_v42 }
  0xd5   :  { %v967_v60 = vadd.f32 %v966_v24, %v934_v51  ;;  %v1398_v30 = vadd.f32 %v1397_v26, %v1396_v25  ;;  %v1418_v48 = vmul.f32 %v1661_v41, %v1417_v43 }
  0xd7   :  { %v991_v36 = vpop.f32.mrf.mxu1  ;;  %v1419_v51 = vadd.f32 %v1661_v41, %v1418_v48 }
  0xd8   :  { %v992_v1 = vadd.f32 %v991_v36, %v967_v60 }
  0xd9   :  { %v1020_v38 = vpop.f32.mrf.mxu2  ;;  %v1421_v54 = vsel %vm1420_vm11, %v1661_v41, %v1419_v51 }
  0xda   :  { %v1061_v39 = vpop.f32.mrf.mxu3  ;;  %v1381_v8 = vmul.f32 %v1375_v61, %v992_v1  ;;  %vm1368_vm7 = vcmp.gt.f32.partialorder %v992_v1, 0.0 }
  0xdb   :  { %v1062_v44 = vadd.f32 %v1061_v39, %v1020_v38 }
  0xdc   :  { %v1091_v46 = vpop.f32.mrf.mxu0  ;;  %v1388_v18 = vsel %vm1368_vm7, %v992_v1, %v1381_v8 }
  0xdd   :  { %v1092_v52 = vadd.f32 %v1091_v46, %v1062_v44  ;;  %v1399_v29 = vsel %vm1391_vm6, %v1388_v18, 0.0 }
  0xde   :  { %v1400_v35 = vadd.f32 %v1399_v29, %v1398_v30 }
  0xe1   :  { %v1118_v53 = vpop.f32.mrf.mxu1 }
  0xe2   :  { %v1119_v56 = vadd.f32 %v1118_v53, %v1092_v52  ;;  %v1151_v57 = vpop.f32.mrf.mxu2 }
  0xe4   :  { %v1176_v62 = vpop.f32.mrf.mxu3  ;;  %v1152_v31 = vadd.f32 %v1151_v57, %v1119_v56 }
  0xe6   :  { %v1177_v6 = vadd.f32 %v1176_v62, %v1152_v31 }
  0xe7   :  { %v1205_v3 = vpop.f32.mrf.mxu0 }
  0xe8   :  { %v1382_v16 = vmul.f32 %v1375_v61, %v1177_v6  ;;  %vm1369_vm8 = vcmp.gt.f32.partialorder %v1177_v6, 0.0 }
  0xe9   :  { %v1246_v7 = vpop.f32.mrf.mxu1 }
  0xea   :  { %v1247_v2 = vadd.f32 %v1246_v7, %v1205_v3  ;;  %v1389_v27 = vsel %vm1369_vm8, %v1177_v6, %v1382_v16 }
  0xeb   :  { %v1401_v33 = vsel %vm1391_vm6, %v1389_v27, 0.0 }
  0xec   :  { %v1276_v13 = vpop.f32.mrf.mxu2  ;;  %v1402_v37 = vadd.f32 %v1401_v33, %v1400_v35 }
  0xed   :  { %v1277_v12 = vadd.f32 %v1276_v13, %v1247_v2 }
  0xee   :  { %v1303_v19 = vpop.f32.mrf.mxu3 }
  0xef   :  { %v1304_v21 = vadd.f32 %v1303_v19, %v1277_v12 }
  0xf0   :  { %v1336_v22 = vpop.f32.mrf.mxu0 }
  0xf1   :  { %v1337_v24 = vadd.f32 %v1336_v22, %v1304_v21  ;;  %v1361_v28 = vpop.f32.mrf.mxu1 }
  0xf3   :  { %v1362_v32 = vadd.f32 %v1361_v28, %v1337_v24 }
  0xf5   :  { %vm1370_vm9 = vcmp.gt.f32.partialorder %v1362_v32, 0.0  ;;  %v1383_v34 = vmul.f32 %v1375_v61, %v1362_v32 }
  0xf7   :  { %v1390_v36 = vsel %vm1370_vm9, %v1362_v32, %v1383_v34 }
  0xf8   :  { %v1404_v38 = vsel %vm1403_vm10, %v1390_v36, 0.0 }
  0xf9   :  { %v1405_v39 = vadd.f32 %v1404_v38, %v1402_v37 }
  0xfb   :  { %1406 = vadd.xlane.f32.xlu0 %v1405_v39 }
 0x16e   :  { %v1407_v44 = vpop.xlane.xlu0 %1406 }
 0x16f   :  { %v1408_v46 = vrot.slane %v1407_v44, 4 }
 0x171   :  { %v1409_v47 = vadd.f32 %v1408_v46, %v1407_v44 }
 0x173   :  { %v1410_v49 = vrot.slane %v1409_v47, 2 }
 0x175   :  { %v1411_v50 = vadd.f32 %v1410_v49, %v1409_v47 }
 0x177   :  { %v1412_v52 = vrot.slane %v1411_v50, 1 }
 0x179   :  { %v1413_v53 = vadd.f32 %v1412_v52, %v1411_v50 }
 0x17b   :  { %1649 = vpush %v1413_v53 }
 0x17c   :  { %1651 = vpush %v1421_v54 }
 0x1ac   :  { %s1650_s0 = spop %1649 }
 0x1ad   :  { %s2239_s15 = spop %1651 }
 0x1ae   :  { %s1423_s16 = smul.f32 %s2239_s15, %s1650_s0 }
 0x1b0   :  { %v1424_v55 = vstv %s1423_s16 }
 0x1b1   :  { %v1425_v56 = vsub.f32 %v1384_v9, %v1424_v55  ;;  %v1426_v57 = vsub.f32 %v2229_v4, %v1424_v55  ;;  %v1427_v58 = vsub.f32 %v1386_v10, %v1424_v55  ;;  %v1428_v59 = vsub.f32 %v1387_v14, %v1424_v55 }
 0x1b2   :  { %v1429_v60 = vsub.f32 %v1388_v18, %v1424_v55  ;;  %v1430_v23 = vsub.f32 %v1389_v27, %v1424_v55  ;;  %v1431_v3 = vsub.f32 %v1390_v36, %v1424_v55 }
 0x1b3   :  { %v1432_v61 = vmul.f32 %v1425_v56, %v1425_v56  ;;  %v1433_v62 = vmul.f32 %v1426_v57, %v1426_v57  ;;  %v1434_v63 = vmul.f32 %v1427_v58, %v1427_v58  ;;  %v1435_v31 = vmul.f32 %v1428_v59, %v1428_v59 }
 0x1b4   :  { %v1436_v5 = vmul.f32 %v1429_v60, %v1429_v60  ;;  %v1437_v2 = vmul.f32 %v1430_v23, %v1430_v23  ;;  %v1438_v10 = vmul.f32 %v1431_v3, %v1431_v3 }
 0x1b5   :  { %v1439_v45 = vsel %vm1391_vm6, %v1432_v61, 0.0  ;;  %v1440_v0 = vsel %vm1391_vm6, %v1433_v62, 0.0  ;;  %v1442_v6 = vsel %vm1391_vm6, %v1434_v63, 0.0  ;;  %v1444_v4 = vsel %vm1391_vm6, %v1435_v31, 0.0 }
 0x1b6   :  { %v1441_v1 = vadd.f32 %v1440_v0, %v1439_v45  ;;  %v1446_v8 = vsel %vm1391_vm6, %v1436_v5, 0.0  ;;  %v1448_v13 = vsel %vm1391_vm6, %v1437_v2, 0.0  ;;  %v1450_v16 = vsel %vm1403_vm10, %v1438_v10, 0.0 }
 0x1b8   :  { %v1443_v7 = vadd.f32 %v1442_v6, %v1441_v1 }
 0x1ba   :  { %v1445_v9 = vadd.f32 %v1444_v4, %v1443_v7 }
 0x1bc   :  { %v1447_v11 = vadd.f32 %v1446_v8, %v1445_v9 }
 0x1be   :  { %v1449_v14 = vadd.f32 %v1448_v13, %v1447_v11 }
 0x1c0   :  { %v1451_v12 = vadd.f32 %v1450_v16, %v1449_v14 }
 0x1c2   :  { %1452 = vadd.xlane.f32.xlu1 %v1451_v12 }
 0x235   :  { %v1453_v15 = vpop.xlane.xlu1 %1452 }
 0x236   :  { %v1454_v17 = vrot.slane %v1453_v15, 4 }
 0x238   :  { %v1455_v19 = vadd.f32 %v1454_v17, %v1453_v15 }
 0x23a   :  { %v1456_v20 = vrot.slane %v1455_v19, 2 }
 0x23c   :  { %v1457_v18 = vadd.f32 %v1456_v20, %v1455_v19 }
 0x23e   :  { %v1458_v21 = vrot.slane %v1457_v18, 1 }
 0x240   :  { %v1459_v22 = vadd.f32 %v1458_v21, %v1457_v18 }
 0x242   :  { %1653 = vpush %v1459_v22 }
 0x273   :  { %s1654_s17 = spop %1653 }
 0x274   :  { %s1469_s18 = smul.f32 %s1654_s17, %s2239_s15 }
 0x276   :  { %s1470_s19 = sadd.f32 1e-05, %s1469_s18 }
 0x278   :  { %v1471_v26 = vstv %s1470_s19 }
 0x279   :  { %1662 = vrsqrt.f32 %v1471_v26  ;;  %vm1478_vm13 = vweird.f32 %v1471_v26 }
 0x27f   :  { %v1663_v25 = vpop.eup %1662 }
 0x280   :  { %v1473_v27 = vmul.f32 %v1663_v25, %v1471_v26  ;;  %vm1479_vm12 = vweird.f32 %v1663_v25 }
 0x281   :  { %vm1480_vm14 = vmor %vm1478_vm13, %vm1479_vm12 }
 0x282   :  { %v1474_v24 = vmul.f32 %v1663_v25, %v1473_v27 }
 0x284   :  { %v1475_v28 = vmul.f32 0.5, %v1474_v24 }
 0x286   :  { %v1476_v29 = vsub.f32 1.5, %v1475_v28 }
 0x288   :  { %v1477_v30 = vmul.f32 %v1663_v25, %v1476_v29 }
 0x28a   :  { %v1481_v32 = vsel %vm1480_vm14, %v1663_v25, %v1477_v30 }
 0x28b   :  { %1655 = vpush %v1481_v32 }
 0x2bc   :  { %s1656_s20 = spop %1655 }
 0x2bd   :  { %v1483_v33 = vstv %s1656_s20 }
 0x2be   :  { %v2251_v34 = vmul.f32 %v1483_v33, %v1425_v56  ;;  %v2253_v35 = vmul.f32 %v1483_v33, %v1426_v57  ;;  %v2255_v36 = vmul.f32 %v1483_v33, %v1427_v58  ;;  %v2257_v37 = vmul.f32 %v1483_v33, %v1428_v59 }
 0x2bf   :  { %v2259_v38 = vmul.f32 %v1483_v33, %v1429_v60  ;;  %v2261_v39 = vmul.f32 %v1483_v33, %v1430_v23  ;;  %v2263_v40 = vmul.f32 %v1483_v33, %v1431_v3 }
 0x2c0   :  { %v1491_v41 = vsel %vm1391_vm6, %v2251_v34, -inf  ;;  %v1498_v42 = vsel %vm1391_vm6, %v2253_v35, -inf  ;;  %v1505_v43 = vsel %vm1391_vm6, %v2255_v36, -inf  ;;  %v1512_v44 = vsel %vm1391_vm6, %v2257_v37, -inf }
 0x2c1   :  { %v1492_v46 = vrot.slane %v1491_v41, 4  ;;  %v1499_v47 = vrot.slane %v1498_v42, 4  ;;  %v1506_v48 = vrot.slane %v1505_v43, 4  ;;  %v1513_v49 = vrot.slane %v1512_v44, 4 }
 0x2c2   :  { %v1519_v50 = vsel %vm1391_vm6, %v2259_v38, -inf  ;;  %v1526_v51 = vsel %vm1391_vm6, %v2261_v39, -inf  ;;  %v1533_v52 = vsel %vm1403_vm10, %v2263_v40, -inf }
 0x2c3   :  { %v1493_v53 = vmax.f32 %v1491_v41, %v1492_v46  ;;  %v1500_v54 = vmax.f32 %v1498_v42, %v1499_v47  ;;  %v1507_v55 = vmax.f32 %v1505_v43, %v1506_v48  ;;  %v1514_v56 = vmax.f32 %v1512_v44, %v1513_v49 }
 0x2c4   :  { %v1520_v57 = vrot.slane %v1519_v50, 4  ;;  %v1527_v58 = vrot.slane %v1526_v51, 4  ;;  %v1534_v59 = vrot.slane %v1533_v52, 4 }
 0x2c5   :  { %v1494_v60 = vrot.slane %v1493_v53, 2  ;;  %v1501_v61 = vrot.slane %v1500_v54, 2  ;;  %v1508_v62 = vrot.slane %v1507_v55, 2  ;;  %v1515_v63 = vrot.slane %v1514_v56, 2 }
 0x2c6   :  { %v1521_v23 = vmax.f32 %v1519_v50, %v1520_v57  ;;  %v1528_v31 = vmax.f32 %v1526_v51, %v1527_v58  ;;  %v1535_v45 = vmax.f32 %v1533_v52, %v1534_v59 }
 0x2c7   :  { %v1495_v0 = vmax.f32 %v1493_v53, %v1494_v60  ;;  %v1502_v1 = vmax.f32 %v1500_v54, %v1501_v61  ;;  %v1509_v3 = vmax.f32 %v1507_v55, %v1508_v62  ;;  %v1516_v5 = vmax.f32 %v1514_v56, %v1515_v63 }
 0x2c8   :  { %v1522_v6 = vrot.slane %v1521_v23, 2  ;;  %v1529_v7 = vrot.slane %v1528_v31, 2  ;;  %v1536_v2 = vrot.slane %v1535_v45, 2 }
 0x2c9   :  { %v1496_v4 = vrot.slane %v1495_v0, 1  ;;  %v1503_v9 = vrot.slane %v1502_v1, 1  ;;  %v1510_v10 = vrot.slane %v1509_v3, 1  ;;  %v1517_v8 = vrot.slane %v1516_v5, 1 }
 0x2ca   :  { %v1523_v11 = vmax.f32 %v1521_v23, %v1522_v6  ;;  %v1530_v13 = vmax.f32 %v1528_v31, %v1529_v7  ;;  %v1537_v14 = vmax.f32 %v1535_v45, %v1536_v2 }
 0x2cb   :  { %v2279_v16 = vmax.f32 %v1495_v0, %v1496_v4  ;;  %v2281_v12 = vmax.f32 %v1502_v1, %v1503_v9  ;;  %v2283_v15 = vmax.f32 %v1509_v3, %v1510_v10  ;;  %v2285_v17 = vmax.f32 %v1516_v5, %v1517_v8 }
 0x2cc   :  { %v1524_v19 = vrot.slane %v1523_v11, 1  ;;  %v1531_v20 = vrot.slane %v1530_v13, 1  ;;  %v1538_v18 = vrot.slane %v1537_v14, 1 }
 0x2cd   :  { %v1540_v21 = vsub.f32 %v2251_v34, %v2279_v16  ;;  %v1541_v22 = vsub.f32 %v2253_v35, %v2281_v12  ;;  %v1542_v26 = vsub.f32 %v2255_v36, %v2283_v15  ;;  %v1543_v25 = vsub.f32 %v2257_v37, %v2285_v17 }
 0x2ce   :  { %v2295_v27 = vmax.f32 %v1523_v11, %v1524_v19  ;;  %v2297_v24 = vmax.f32 %v1530_v13, %v1531_v20  ;;  %v2299_v28 = vmax.f32 %v1537_v14, %v1538_v18 }
 0x2cf   :  { %v1547_v29 = vmul.f32 1.442695, %v1540_v21  ;;  %v1549_v30 = vmul.f32 1.442695, %v1541_v22  ;;  %v1551_v32 = vmul.f32 1.442695, %v1542_v26 }
 0x2d0   :  { %v1544_v33 = vsub.f32 %v2259_v38, %v2295_v27  ;;  %v1545_v41 = vsub.f32 %v2261_v39, %v2297_v24  ;;  %v1546_v42 = vsub.f32 %v2263_v40, %v2299_v28  ;;  %v1553_v43 = vmul.f32 1.442695, %v1543_v25 }
 0x2d1   :  { %1664 = vpow2.f32 %v1547_v29 }
 0x2d2   :  { %1666 = vpow2.f32 %v1549_v30  ;;  %v1555_v44 = vmul.f32 1.442695, %v1544_v33  ;;  %v1557_v46 = vmul.f32 1.442695, %v1545_v41  ;;  %v1559_v47 = vmul.f32 1.442695, %v1546_v42 }
 0x2d3   :  { %1668 = vpow2.f32 %v1551_v32 }
 0x2d4   :  { %1670 = vpow2.f32 %v1553_v43 }
 0x2d5   :  { %1672 = vpow2.f32 %v1555_v44 }
 0x2d6   :  { %1674 = vpow2.f32 %v1557_v46 }
 0x2d7   :  { %v1665_v48 = vpop.eup %1664  ;;  %1676 = vpow2.f32 %v1559_v47 }
 0x2d8   :  { %v1667_v49 = vpop.eup %1666  ;;  %v1561_v50 = vsel %vm1391_vm6, %v1665_v48, 0.0 }
 0x2d9   :  { %v1669_v51 = vpop.eup %1668  ;;  %v1562_v52 = vrot.slane %v1561_v50, 4  ;;  %v1568_v53 = vsel %vm1391_vm6, %v1667_v49, 0.0 }
 0x2da   :  { %v1671_v54 = vpop.eup %1670  ;;  %v1569_v55 = vrot.slane %v1568_v53, 4  ;;  %v1575_v56 = vsel %vm1391_vm6, %v1669_v51, 0.0 }
 0x2db   :  { %v1673_v57 = vpop.eup %1672  ;;  %v1563_v58 = vadd.f32 %v1562_v52, %v1561_v50  ;;  %v1576_v59 = vrot.slane %v1575_v56, 4  ;;  %v1582_v60 = vsel %vm1391_vm6, %v1671_v54, 0.0 }
 0x2dc   :  { %v1675_v61 = vpop.eup %1674  ;;  %v1570_v62 = vadd.f32 %v1569_v55, %v1568_v53  ;;  %v1583_v63 = vrot.slane %v1582_v60, 4  ;;  %v1589_v23 = vsel %vm1391_vm6, %v1673_v57, 0.0 }
 0x2dd   :  { %v1677_v31 = vpop.eup %1676  ;;  %v1564_v45 = vrot.slane %v1563_v58, 2  ;;  %v1577_v0 = vadd.f32 %v1576_v59, %v1575_v56  ;;  %v1590_v1 = vrot.slane %v1589_v23, 4  ;;  %v1596_v3 = vsel %vm1391_vm6, %v1675_v61, 0.0 }
 0x2de   :  { %v1571_v5 = vrot.slane %v1570_v62, 2  ;;  %v1584_v6 = vadd.f32 %v1583_v63, %v1582_v60  ;;  %v1597_v7 = vrot.slane %v1596_v3, 4  ;;  %v1603_v2 = vsel %vm1403_vm10, %v1677_v31, 0.0 }
 0x2df   :  { %v1565_v4 = vadd.f32 %v1564_v45, %v1563_v58  ;;  %v1578_v9 = vrot.slane %v1577_v0, 2  ;;  %v1591_v10 = vadd.f32 %v1590_v1, %v1589_v23  ;;  %v1604_v8 = vrot.slane %v1603_v2, 4 }
 0x2e0   :  { %v1572_v11 = vadd.f32 %v1571_v5, %v1570_v62  ;;  %v1585_v13 = vrot.slane %v1584_v6, 2  ;;  %v1598_v14 = vadd.f32 %v1597_v7, %v1596_v3 }
 0x2e1   :  { %v1566_v19 = vrot.slane %v1565_v4, 1  ;;  %v1579_v20 = vadd.f32 %v1578_v9, %v1577_v0  ;;  %v1592_v18 = vrot.slane %v1591_v10, 2  ;;  %v1605_v21 = vadd.f32 %v1604_v8, %v1603_v2 }
 0x2e2   :  { %v1573_v22 = vrot.slane %v1572_v11, 1  ;;  %v1586_v26 = vadd.f32 %v1585_v13, %v1584_v6  ;;  %v1599_v25 = vrot.slane %v1598_v14, 2 }
 0x2e3   :  { %v1567_v29 = vadd.f32 %v1566_v19, %v1565_v4  ;;  %v1580_v30 = vrot.slane %v1579_v20, 1  ;;  %v1593_v32 = vadd.f32 %v1592_v18, %v1591_v10  ;;  %v1606_v33 = vrot.slane %v1605_v21, 2 }
 0x2e4   :  { %v1574_v41 = vadd.f32 %v1573_v22, %v1572_v11  ;;  %v1587_v42 = vrot.slane %v1586_v26, 1  ;;  %v1600_v43 = vadd.f32 %v1599_v25, %v1598_v14 }
 0x2e5   :  { %v1581_v44 = vadd.f32 %v1580_v30, %v1579_v20  ;;  %v1594_v46 = vrot.slane %v1593_v32, 1  ;;  %v1607_v47 = vadd.f32 %v1606_v33, %v1605_v21  ;;  %1678 = vlog2.f32 %v1567_v29 }
 0x2e6   :  { %v1588_v48 = vadd.f32 %v1587_v42, %v1586_v26  ;;  %v1601_v49 = vrot.slane %v1600_v43, 1  ;;  %1680 = vlog2.f32 %v1574_v41 }
 0x2e7   :  { %v1595_v50 = vadd.f32 %v1594_v46, %v1593_v32  ;;  %v1608_v51 = vrot.slane %v1607_v47, 1  ;;  %1682 = vlog2.f32 %v1581_v44 }
 0x2e8   :  { %v1602_v52 = vadd.f32 %v1601_v49, %v1600_v43  ;;  %1684 = vlog2.f32 %v1588_v48 }
 0x2e9   :  { %v1609_v53 = vadd.f32 %v1608_v51, %v1607_v47  ;;  %1686 = vlog2.f32 %v1595_v50 }
 0x2ea   :  { %1688 = vlog2.f32 %v1602_v52 }
 0x2eb   :  { %v1679_v54 = vpop.eup %1678  ;;  %1690 = vlog2.f32 %v1609_v53 }
 0x2ec   :  { %v1681_v55 = vpop.eup %1680  ;;  %v1611_v56 = vmul.f32 0.6931472, %v1679_v54 }
 0x2ed   :  { %v1683_v57 = vpop.eup %1682  ;;  %v1613_v58 = vmul.f32 0.6931472, %v1681_v55 }
 0x2ee   :  { %v1685_v59 = vpop.eup %1684  ;;  %v1615_v60 = vmul.f32 0.6931472, %v1683_v57  ;;  %v1624_v61 = vadd.f32 %v1611_v56, %v2279_v16 }
 0x2ef   :  { %v1687_v62 = vpop.eup %1686  ;;  %v1617_v63 = vmul.f32 0.6931472, %v1685_v59  ;;  %v1625_v23 = vadd.f32 %v1613_v58, %v2281_v12 }
 0x2f0   :  { %v1689_v31 = vpop.eup %1688  ;;  %v1619_v45 = vmul.f32 0.6931472, %v1687_v62  ;;  %v1626_v0 = vadd.f32 %v1615_v60, %v2283_v15  ;;  %v1631_v1 = vsub.f32 %v2251_v34, %v1624_v61 }
 0x2f1   :  { %v1691_v3 = vpop.eup %1690  ;;  %v1621_v5 = vmul.f32 0.6931472, %v1689_v31  ;;  %v1627_v6 = vadd.f32 %v1617_v63, %v2285_v17  ;;  %v1632_v7 = vsub.f32 %v2253_v35, %v1625_v23 }
 0x2f2   :  { %v1623_v2 = vmul.f32 0.6931472, %v1691_v3  ;;  %v1628_v4 = vadd.f32 %v1619_v45, %v2295_v27  ;;  %v1633_v16 = vsub.f32 %v2255_v36, %v1626_v0  ;;  %1638 = vst [vmem:[%s2353_s3] sm:$0x3f] %v1631_v1 }
 0x2f3   :  { %v1629_v12 = vadd.f32 %v1621_v5, %v2297_v24  ;;  %v1634_v15 = vsub.f32 %v2257_v37, %v1627_v6  ;;  %1639 = vst [vmem:[%s2353_s3 + $0x8] sm:$0x3f] %v1632_v7 }
 0x2f4   :  { %v1630_v34 = vadd.f32 %v1623_v2, %v2299_v28  ;;  %v1635_v35 = vsub.f32 %v2259_v38, %v1628_v4  ;;  %1640 = vst [vmem:[%s2353_s3 + $0x10] sm:$0x3f] %v1633_v16 }
 0x2f5   :  { %v1636_v36 = vsub.f32 %v2261_v39, %v1629_v12  ;;  %1641 = vst [vmem:[%s2353_s3 + $0x18] sm:$0x3f] %v1634_v15 }
 0x2f6   :  { %v1637_v37 = vsub.f32 %v2263_v40, %v1630_v34  ;;  %1642 = vst [vmem:[%s2353_s3 + $0x20] sm:$0x3f] %v1635_v35 }
 0x2f7   :  { %1643 = vst [vmem:[%s2353_s3 + $0x28] sm:$0x3f] %v1636_v36 }
 0x2f8   :  { %1644 = vst.msk [vmem:[%s2353_s3 + $0x30] sm:$0x3f] %vm1403_vm10, %v1637_v37 }

</bundles_post_ra>
